<compile_context>
chip_gen: v6e
topology: v6e:2x2x1
jax: 0.10.0
libtpu: 0.0.40
codegen_flags: <defaults>
</compile_context>

<pallas_src>
import functools

import jax
import jax.numpy as jnp
from jax import lax
from jax.experimental import pallas as pl
from jax.experimental.pallas import tpu as pltpu

WINDOW_SIZES = (1, 2, 3, 5)
NUM_FILTERS = 20                         # out_channels of every Conv2d
W_MAX = max(WINDOW_SIZES)                # 5
P = W_MAX - 1                            # maximal one-sided padding = 4
NW = len(WINDOW_SIZES)
NF = NW * NUM_FILTERS                    # 80 concatenated features


def _round_up(x, m):
    return (x + m - 1) // m * m


def cnn_kernel(tok_ref, a_ref, consts_ref, fcw_ref, out_ref, *, tb, n_pos):
    """One grid step = one batch block of `tb` elements.

    tok_ref    : (n_pos*tb, W_MAX) int32  token-tap table, conv-position major
                 (-1 = tap falls in the zero padding)
    a_ref      : (W_MAX*Vpad, NF) bf16    folded (embedding @ conv weight) for all taps/windows
    consts_ref : (3, CW) f32              row0 conv bias, row1 min valid position per lane,
                                          row2 fc bias (first O lanes)
    fcw_ref    : (NF, O) f32              fc weight, window-major feature order
    out_ref    : (tb, O) f32
    """
    taps = tok_ref[...]                                        # (R, W_MAX) int32
    r_rows, n_taps = taps.shape
    v_pad = a_ref.shape[0] // n_taps
    nf = a_ref.shape[1]
    o_dim = out_ref.shape[1]

    # Fused embedding gather + zero padding: one-hot over (tap, vocab).  Sentinel -1
    # never matches the iota, so padding positions become all-zero rows.
    iota_v = lax.broadcasted_iota(jnp.int32, (r_rows, v_pad), 1)
    onehot = jnp.concatenate(
        [(taps[:, k:k + 1] == iota_v).astype(jnp.bfloat16) for k in range(n_taps)],
        axis=1)                                                # (R, W_MAX*Vpad) bf16

    # Embedding gather + all 4 window convolutions in a single MXU matmul (f32 acc).
    pre = jnp.dot(onehot, a_ref[...], preferred_element_type=jnp.float32)   # (R, NF)
    act = jnp.tanh(pre + consts_ref[0:1, :nf])                 # f32 bias add + tanh (EUP)

    # Global max-pool over conv positions, per window.  Lanes whose window does not
    # produce an output at position s (s < W_MAX - w) are masked to -2 (< tanh range).
    min_s = consts_ref[1:2, :nf]                               # (1, NF)
    pooled = jnp.full((tb, nf), -2.0, dtype=jnp.float32)
    for s in range(n_pos):                                     # static unroll, aligned slices
        blk = act[s * tb:(s + 1) * tb, :]                      # (tb, NF)
        if s < P:
            blk = jnp.where(min_s <= float(s), blk, -2.0)
        pooled = jnp.maximum(pooled, blk)

    # Single fc matmul over the concatenated pooled features.
    logits = jnp.dot(pooled, fcw_ref[...], preferred_element_type=jnp.float32)
    out_ref[...] = logits + consts_ref[2:3, :o_dim]


def cnn_forward_pallas(tokens, params, *, embed_dim, output_dim):
    B, L = tokens.shape
    E = embed_dim
    O = output_dim
    C = NUM_FILTERS
    V = params["embed"].shape[0]
    Vp = _round_up(V, 128)               # lane-aligned one-hot width per tap
    G = L + P                            # conv positions shared by all windows (s axis)

    # --- batch blocking: >=2 grid steps when the batch allows it (v7x has 2 TCs) ---
    if B <= 8:
        TB = 8
    else:
        TB = min(128, _round_up((B + 1) // 2, 8))
    Bp = _round_up(B, TB)
    num_blocks = Bp // TB
    R = G * TB                           # rows per grid step (conv-position major)

    # --- token tap table: taps[b, s, k] = tokens[b, s + k - P] or -1 (padding) ---
    s_idx = jnp.arange(G)
    k_idx = jnp.arange(W_MAX)
    src = s_idx[:, None] + k_idx[None, :] - P                  # (G, W_MAX)
    ok = (src >= 0) & (src < L)
    src_c = jnp.clip(src, 0, L - 1)
    tok_pad = jnp.pad(tokens.astype(jnp.int32), ((0, Bp - B), (0, 0)))      # (Bp, L)
    taps = jnp.where(ok[None], tok_pad[:, src_c], -1)                       # (Bp, G, W_MAX)
    # reorder rows conv-position-major inside each batch block: row = s*TB + b_local
    taps = taps.reshape(num_blocks, TB, G, W_MAX).transpose(0, 2, 1, 3)
    tok_taps = taps.reshape(num_blocks * R, W_MAX)

    # --- folded gather+conv weight: A[k*Vp + v, wi*C + c] = emb[v] . W[wi][c,0,k,:] ---
    emb_tab = params["embed"].astype(jnp.float32)                           # (V, E)
    A = jnp.zeros((W_MAX * Vp, NF), jnp.float32)
    for wi, w in enumerate(WINDOW_SIZES):
        Wc = params["conv_w"][wi].astype(jnp.float32)                       # (C, 1, w, E)
        for k in range(w):                                                  # taps k >= w stay zero
            blk = emb_tab @ Wc[:, 0, k, :].T                                # (V, C)
            A = A.at[k * Vp:k * Vp + V, wi * C:(wi + 1) * C].set(blk)
    A = A.astype(jnp.bfloat16)

    # --- packed constants: conv bias / per-lane min valid position / fc bias ---
    CW = max(NF, O)
    conv_b = jnp.concatenate([params["conv_b"][wi].astype(jnp.float32) for wi in range(NW)])
    min_s = jnp.concatenate([jnp.full((C,), float(W_MAX - w), jnp.float32)
                             for w in WINDOW_SIZES])
    row0 = jnp.zeros((CW,), jnp.float32).at[:NF].set(conv_b)
    row1 = jnp.zeros((CW,), jnp.float32).at[:NF].set(min_s)
    row2 = jnp.zeros((CW,), jnp.float32).at[:O].set(params["fc_b"].astype(jnp.float32))
    consts = jnp.stack([row0, row1, row2], axis=0)                          # (3, CW)

    # --- fc weight permuted from torch channel-major flatten (c*NW + wi) to (wi*C + c) ---
    fcw = params["fc_w"].astype(jnp.float32)                                # (O, NF)
    fcw = jnp.transpose(fcw.reshape(O, C, NW), (2, 1, 0)).reshape(NF, O)    # (NF, O)

    out = pl.pallas_call(
        functools.partial(cnn_kernel, tb=TB, n_pos=G),
        grid=(num_blocks,),
        in_specs=[
            pl.BlockSpec((R, W_MAX), lambda i: (i, 0)),       # token taps (batch-blocked)
            pl.BlockSpec((W_MAX * Vp, NF), lambda i: (0, 0)),  # folded gather+conv weight
            pl.BlockSpec((3, CW), lambda i: (0, 0)),           # packed biases / mask row
            pl.BlockSpec((NF, O), lambda i: (0, 0)),           # fc weight
        ],
        out_specs=pl.BlockSpec((TB, O), lambda i: (i, 0)),
        out_shape=jax.ShapeDtypeStruct((Bp, O), jnp.float32),
        compiler_params=pltpu.CompilerParams(dimension_semantics=("parallel",)),
    )(tok_taps, A, consts, fcw)
    return out[:B]


def cnn_forward_ref(tokens, params):
    """Pure-JAX (f32) mirror of the PyTorch forward, for verification."""
    emb = params["embed"][tokens].astype(jnp.float32)          # (B, L, E)
    B, L, _ = emb.shape
    feats = []
    for wi, w in enumerate(WINDOW_SIZES):
        pad = w - 1
        xp = jnp.pad(emb, ((0, 0), (pad, pad), (0, 0)))
        T = L + w - 1
        Wc = params["conv_w"][wi].astype(jnp.float32)          # (C, 1, w, E)
        y = jnp.zeros((B, T, NUM_FILTERS), jnp.float32)
        for k in range(w):
            y = y + jnp.einsum('bte,ce->btc', xp[:, k:k + T, :], Wc[:, 0, k, :])
        y = jnp.tanh(y + params["conv_b"][wi][None, None, :])
        feats.append(jnp.max(y, axis=1))                       # (B, C)
    feat = jnp.stack(feats, axis=-1).reshape(B, NUM_FILTERS * NW)
    return feat @ params["fc_w"].T + params["fc_b"]


if __name__ == "__main__":
    vocab_size, embed_dim, output_dim = 50, 32, 8
    B, L = 2, 10

    key = jax.random.PRNGKey(0)
    k_tok, k_emb, k_fcw, k_fcb, *k_conv = jax.random.split(key, 4 + 2 * len(WINDOW_SIZES))

    tokens = jax.random.randint(k_tok, (B, L), 0, vocab_size + 1, dtype=jnp.int32)
    params = {
        "embed": 0.1 * jax.random.normal(k_emb, (vocab_size + 1, embed_dim), jnp.float32),
        "conv_w": [0.1 * jax.random.normal(k_conv[2 * i],
                                           (NUM_FILTERS, 1, w, embed_dim), jnp.float32)
                   for i, w in enumerate(WINDOW_SIZES)],
        "conv_b": [0.1 * jax.random.normal(k_conv[2 * i + 1], (NUM_FILTERS,), jnp.float32)
                   for i in range(len(WINDOW_SIZES))],
        "fc_w": 0.1 * jax.random.normal(k_fcw,
                                        (output_dim, NUM_FILTERS * len(WINDOW_SIZES)),
                                        jnp.float32),
        "fc_b": 0.1 * jax.random.normal(k_fcb, (output_dim,), jnp.float32),
    }

    out = cnn_forward_pallas(tokens, params, embed_dim=embed_dim, output_dim=output_dim)
    out = jax.block_until_ready(out)

    ref = cnn_forward_ref(tokens, params)
    assert out.shape == (B, output_dim), out.shape
    assert jnp.allclose(out, ref, atol=1e-2, rtol=1e-2), (out, ref)
    print("KERNEL_OK")
</pallas_src>

<mosaic_0001>
module attributes {stable_mosaic.version = 11 : i64} {
  func.func @cnn_kernel(%arg0: i32, %arg1: memref<112x5xi32, #tpu.memory_space<vmem>>, %arg2: memref<640x80xbf16, #tpu.memory_space<vmem>>, %arg3: memref<3x80xf32, #tpu.memory_space<vmem>>, %arg4: memref<80x8xf32, #tpu.memory_space<vmem>>, %arg5: memref<8x8xf32, #tpu.memory_space<vmem>>) attributes {dimension_semantics = [#tpu.dimension_semantics<parallel>], iteration_bounds = array<i64: 1>, scalar_prefetch = 0 : i64, scratch_operands = 0 : i64, tpu.core_type = #tpu.core_type<tc>, window_params = [{transform_indices = @transform_0, window_bounds = array<i64: 112, 5>}, {pipeline_mode = #tpu.pipeline_mode<synchronous>, transform_indices = @transform_1, window_bounds = array<i64: 640, 80>}, {pipeline_mode = #tpu.pipeline_mode<synchronous>, transform_indices = @transform_2, window_bounds = array<i64: 3, 80>}, {pipeline_mode = #tpu.pipeline_mode<synchronous>, transform_indices = @transform_3, window_bounds = array<i64: 80, 8>}, {transform_indices = @transform_4, window_bounds = array<i64: 8, 8>}]} {
    %c0 = arith.constant 0 : index
    %c0_0 = arith.constant 0 : index
    %0 = vector.load %arg1[%c0, %c0_0] : memref<112x5xi32, #tpu.memory_space<vmem>>, vector<112x5xi32>
    %1 = tpu.iota {dimensions = array<i32: 1>} : vector<112x128xi32>
    %2 = vector.extract_strided_slice %0 {offsets = [0, 0], sizes = [112, 1], strides = [1, 1]} : vector<112x5xi32> to vector<112x1xi32>
    %3 = vector.broadcast %2 : vector<112x1xi32> to vector<112x128xi32>
    %4 = arith.cmpi eq, %3, %1 : vector<112x128xi32>
    %5 = arith.extui %4 : vector<112x128xi1> to vector<112x128xi32>
    %6 = arith.sitofp %5 : vector<112x128xi32> to vector<112x128xf32>
    %7 = arith.truncf %6 : vector<112x128xf32> to vector<112x128xbf16>
    %8 = vector.extract_strided_slice %0 {offsets = [0, 1], sizes = [112, 1], strides = [1, 1]} : vector<112x5xi32> to vector<112x1xi32>
    %9 = vector.broadcast %8 : vector<112x1xi32> to vector<112x128xi32>
    %10 = arith.cmpi eq, %9, %1 : vector<112x128xi32>
    %11 = arith.extui %10 : vector<112x128xi1> to vector<112x128xi32>
    %12 = arith.sitofp %11 : vector<112x128xi32> to vector<112x128xf32>
    %13 = arith.truncf %12 : vector<112x128xf32> to vector<112x128xbf16>
    %14 = vector.extract_strided_slice %0 {offsets = [0, 2], sizes = [112, 1], strides = [1, 1]} : vector<112x5xi32> to vector<112x1xi32>
    %15 = vector.broadcast %14 : vector<112x1xi32> to vector<112x128xi32>
    %16 = arith.cmpi eq, %15, %1 : vector<112x128xi32>
    %17 = arith.extui %16 : vector<112x128xi1> to vector<112x128xi32>
    %18 = arith.sitofp %17 : vector<112x128xi32> to vector<112x128xf32>
    %19 = arith.truncf %18 : vector<112x128xf32> to vector<112x128xbf16>
    %20 = vector.extract_strided_slice %0 {offsets = [0, 3], sizes = [112, 1], strides = [1, 1]} : vector<112x5xi32> to vector<112x1xi32>
    %21 = vector.broadcast %20 : vector<112x1xi32> to vector<112x128xi32>
    %22 = arith.cmpi eq, %21, %1 : vector<112x128xi32>
    %23 = arith.extui %22 : vector<112x128xi1> to vector<112x128xi32>
    %24 = arith.sitofp %23 : vector<112x128xi32> to vector<112x128xf32>
    %25 = arith.truncf %24 : vector<112x128xf32> to vector<112x128xbf16>
    %26 = vector.extract_strided_slice %0 {offsets = [0, 4], sizes = [112, 1], strides = [1, 1]} : vector<112x5xi32> to vector<112x1xi32>
    %27 = vector.broadcast %26 : vector<112x1xi32> to vector<112x128xi32>
    %28 = arith.cmpi eq, %27, %1 : vector<112x128xi32>
    %29 = arith.extui %28 : vector<112x128xi1> to vector<112x128xi32>
    %30 = arith.sitofp %29 : vector<112x128xi32> to vector<112x128xf32>
    %31 = arith.truncf %30 : vector<112x128xf32> to vector<112x128xbf16>
    %32 = tpu.concatenate %7, %13, %19, %25, %31 in 1 : vector<112x128xbf16>, vector<112x128xbf16>, vector<112x128xbf16>, vector<112x128xbf16>, vector<112x128xbf16> -> vector<112x640xbf16>
    %c0_1 = arith.constant 0 : index
    %c0_2 = arith.constant 0 : index
    %33 = vector.load %arg2[%c0_1, %c0_2] : memref<640x80xbf16, #tpu.memory_space<vmem>>, vector<640x80xbf16>
    %cst = arith.constant dense<0.000000e+00> : vector<112x80xf32>
    %34 = tpu.matmul %32, %33, %cst {dimension_numbers = #tpu.dot_dimension_numbers<[1], [0], [0], [1], [0, 0, 1, 1], [], []>} : vector<112x640xbf16>, vector<640x80xbf16>, vector<112x80xf32> -> vector<112x80xf32>
    %c0_3 = arith.constant 0 : index
    %c0_4 = arith.constant 0 : index
    %35 = vector.load %arg3[%c0_3, %c0_4] : memref<3x80xf32, #tpu.memory_space<vmem>>, vector<1x80xf32>
    %36 = vector.broadcast %35 : vector<1x80xf32> to vector<112x80xf32>
    %37 = arith.addf %34, %36 : vector<112x80xf32>
    %38 = math.tanh %37 : vector<112x80xf32>
    %c1 = arith.constant 1 : index
    %c0_5 = arith.constant 0 : index
    %39 = vector.load %arg3[%c1, %c0_5] : memref<3x80xf32, #tpu.memory_space<vmem>>, vector<1x80xf32>
    %cst_6 = arith.constant -2.000000e+00 : f32
    %40 = vector.broadcast %cst_6 : f32 to vector<8x80xf32>
    %41 = vector.extract_strided_slice %38 {offsets = [0, 0], sizes = [8, 80], strides = [1, 1]} : vector<112x80xf32> to vector<8x80xf32>
    %cst_7 = arith.constant 0.000000e+00 : f32
    %42 = vector.broadcast %cst_7 : f32 to vector<1x80xf32>
    %43 = arith.cmpf ole, %39, %42 : vector<1x80xf32>
    %cst_8 = arith.constant -2.000000e+00 : f32
    %44 = vector.shape_cast %43 : vector<1x80xi1> to vector<1x80xi1>
    %45 = vector.broadcast %44 : vector<1x80xi1> to vector<8x80xi1>
    %46 = vector.broadcast %cst_8 : f32 to vector<8x80xf32>
    %47 = arith.select %45, %41, %46 : vector<8x80xi1>, vector<8x80xf32>
    %48 = arith.maximumf %40, %47 : vector<8x80xf32>
    %49 = vector.extract_strided_slice %38 {offsets = [8, 0], sizes = [8, 80], strides = [1, 1]} : vector<112x80xf32> to vector<8x80xf32>
    %cst_9 = arith.constant 1.000000e+00 : f32
    %50 = vector.broadcast %cst_9 : f32 to vector<1x80xf32>
    %51 = arith.cmpf ole, %39, %50 : vector<1x80xf32>
    %cst_10 = arith.constant -2.000000e+00 : f32
    %52 = vector.shape_cast %51 : vector<1x80xi1> to vector<1x80xi1>
    %53 = vector.broadcast %52 : vector<1x80xi1> to vector<8x80xi1>
    %54 = vector.broadcast %cst_10 : f32 to vector<8x80xf32>
    %55 = arith.select %53, %49, %54 : vector<8x80xi1>, vector<8x80xf32>
    %56 = arith.maximumf %48, %55 : vector<8x80xf32>
    %57 = vector.extract_strided_slice %38 {offsets = [16, 0], sizes = [8, 80], strides = [1, 1]} : vector<112x80xf32> to vector<8x80xf32>
    %cst_11 = arith.constant 2.000000e+00 : f32
    %58 = vector.broadcast %cst_11 : f32 to vector<1x80xf32>
    %59 = arith.cmpf ole, %39, %58 : vector<1x80xf32>
    %cst_12 = arith.constant -2.000000e+00 : f32
    %60 = vector.shape_cast %59 : vector<1x80xi1> to vector<1x80xi1>
    %61 = vector.broadcast %60 : vector<1x80xi1> to vector<8x80xi1>
    %62 = vector.broadcast %cst_12 : f32 to vector<8x80xf32>
    %63 = arith.select %61, %57, %62 : vector<8x80xi1>, vector<8x80xf32>
    %64 = arith.maximumf %56, %63 : vector<8x80xf32>
    %65 = vector.extract_strided_slice %38 {offsets = [24, 0], sizes = [8, 80], strides = [1, 1]} : vector<112x80xf32> to vector<8x80xf32>
    %cst_13 = arith.constant 3.000000e+00 : f32
    %66 = vector.broadcast %cst_13 : f32 to vector<1x80xf32>
    %67 = arith.cmpf ole, %39, %66 : vector<1x80xf32>
    %cst_14 = arith.constant -2.000000e+00 : f32
    %68 = vector.shape_cast %67 : vector<1x80xi1> to vector<1x80xi1>
    %69 = vector.broadcast %68 : vector<1x80xi1> to vector<8x80xi1>
    %70 = vector.broadcast %cst_14 : f32 to vector<8x80xf32>
    %71 = arith.select %69, %65, %70 : vector<8x80xi1>, vector<8x80xf32>
    %72 = arith.maximumf %64, %71 : vector<8x80xf32>
    %73 = vector.extract_strided_slice %38 {offsets = [32, 0], sizes = [8, 80], strides = [1, 1]} : vector<112x80xf32> to vector<8x80xf32>
    %74 = arith.maximumf %72, %73 : vector<8x80xf32>
    %75 = vector.extract_strided_slice %38 {offsets = [40, 0], sizes = [8, 80], strides = [1, 1]} : vector<112x80xf32> to vector<8x80xf32>
    %76 = arith.maximumf %74, %75 : vector<8x80xf32>
    %77 = vector.extract_strided_slice %38 {offsets = [48, 0], sizes = [8, 80], strides = [1, 1]} : vector<112x80xf32> to vector<8x80xf32>
    %78 = arith.maximumf %76, %77 : vector<8x80xf32>
    %79 = vector.extract_strided_slice %38 {offsets = [56, 0], sizes = [8, 80], strides = [1, 1]} : vector<112x80xf32> to vector<8x80xf32>
    %80 = arith.maximumf %78, %79 : vector<8x80xf32>
    %81 = vector.extract_strided_slice %38 {offsets = [64, 0], sizes = [8, 80], strides = [1, 1]} : vector<112x80xf32> to vector<8x80xf32>
    %82 = arith.maximumf %80, %81 : vector<8x80xf32>
    %83 = vector.extract_strided_slice %38 {offsets = [72, 0], sizes = [8, 80], strides = [1, 1]} : vector<112x80xf32> to vector<8x80xf32>
    %84 = arith.maximumf %82, %83 : vector<8x80xf32>
    %85 = vector.extract_strided_slice %38 {offsets = [80, 0], sizes = [8, 80], strides = [1, 1]} : vector<112x80xf32> to vector<8x80xf32>
    %86 = arith.maximumf %84, %85 : vector<8x80xf32>
    %87 = vector.extract_strided_slice %38 {offsets = [88, 0], sizes = [8, 80], strides = [1, 1]} : vector<112x80xf32> to vector<8x80xf32>
    %88 = arith.maximumf %86, %87 : vector<8x80xf32>
    %89 = vector.extract_strided_slice %38 {offsets = [96, 0], sizes = [8, 80], strides = [1, 1]} : vector<112x80xf32> to vector<8x80xf32>
    %90 = arith.maximumf %88, %89 : vector<8x80xf32>
    %91 = vector.extract_strided_slice %38 {offsets = [104, 0], sizes = [8, 80], strides = [1, 1]} : vector<112x80xf32> to vector<8x80xf32>
    %92 = arith.maximumf %90, %91 : vector<8x80xf32>
    %c0_15 = arith.constant 0 : index
    %c0_16 = arith.constant 0 : index
    %93 = vector.load %arg4[%c0_15, %c0_16] : memref<80x8xf32, #tpu.memory_space<vmem>>, vector<80x8xf32>
    %cst_17 = arith.constant dense<0.000000e+00> : vector<8x8xf32>
    %94 = tpu.matmul %92, %93, %cst_17 {dimension_numbers = #tpu.dot_dimension_numbers<[1], [0], [0], [1], [0, 0, 1, 1], [], []>} : vector<8x80xf32>, vector<80x8xf32>, vector<8x8xf32> -> vector<8x8xf32>
    %c2 = arith.constant 2 : index
    %c0_18 = arith.constant 0 : index
    %95 = vector.load %arg3[%c2, %c0_18] : memref<3x80xf32, #tpu.memory_space<vmem>>, vector<1x8xf32>
    %96 = vector.broadcast %95 : vector<1x8xf32> to vector<8x8xf32>
    %97 = arith.addf %94, %96 : vector<8x8xf32>
    %c0_19 = arith.constant 0 : index
    %c0_20 = arith.constant 0 : index
    %98 = vector.load %arg5[%c0_19, %c0_20] : memref<8x8xf32, #tpu.memory_space<vmem>>, vector<8x8xf32>
    tpu.vector_store %arg5[%c0_19, %c0_20], %97 {strides = array<i32>} : memref<8x8xf32, #tpu.memory_space<vmem>>, vector<8x8xf32>,
    return
  }
  func.func @transform_0(%arg0: i32) -> (i32, i32) {
    %c0_i32 = arith.constant 0 : i32
    %c0_i32_0 = arith.constant 0 : i32
    return %arg0, %c0_i32 : i32, i32
  }
  func.func @transform_1(%arg0: i32) -> (i32, i32) {
    %c0_i32 = arith.constant 0 : i32
    %c0_i32_0 = arith.constant 0 : i32
    %c0_i32_1 = arith.constant 0 : i32
    return %c0_i32, %c0_i32_0 : i32, i32
  }
  func.func @transform_2(%arg0: i32) -> (i32, i32) {
    %c0_i32 = arith.constant 0 : i32
    %c0_i32_0 = arith.constant 0 : i32
    %c0_i32_1 = arith.constant 0 : i32
    return %c0_i32, %c0_i32_0 : i32, i32
  }
  func.func @transform_3(%arg0: i32) -> (i32, i32) {
    %c0_i32 = arith.constant 0 : i32
    %c0_i32_0 = arith.constant 0 : i32
    %c0_i32_1 = arith.constant 0 : i32
    return %c0_i32, %c0_i32_0 : i32, i32
  }
  func.func @transform_4(%arg0: i32) -> (i32, i32) {
    %c0_i32 = arith.constant 0 : i32
    %c0_i32_0 = arith.constant 0 : i32
    return %arg0, %c0_i32 : i32, i32
  }
}

</mosaic_0001>

<bundles_post_ra>
// kernel: tpu_custom_call.1
= control target key start
LH: loop header
LB: loop body
LE: loop exit
PB: predicated region body
PF: predicated region fallthrough
CT: control target
= control target key end

     0   :  { %v1794_v2 = vmov 0   ;;  %v1795_v5 = vmov 3   ;;  %v1796_v11 = vmov 1   ;;  %v1797_v40 = vmov 2   ;;  %s2442_s0 = inlined_call_operand.vmem [shape: s32[112,5], index: 0, kind: input, shape index: {}]   ;;  %s2443_s1 = inlined_call_operand.vmem [shape: bf16[640,80], index: 1, kind: input, shape index: {}]   ;;  %s2444_s2 = inlined_call_operand.vmem [shape: f32[3,80], index: 2, kind: input, shape index: {}]   ;;  %s2445_s3 = inlined_call_operand.vmem [shape: f32[80,8], index: 3, kind: input, shape index: {}]   ;;  %s2446_s4 = inlined_call_operand.hbm [shape: f32[8,8], index: 4, kind: output, shape index: {}]  }
   0x1   :  { %v1831_v0 = vld [vmem:[%s2442_s0 + $0x10] sm:$0xff]  ;;  %v1836_v1 = vld [vmem:[%s2442_s0] sm:$0xff]  ;;  %1667 = vset.pattern.permute.xlu0 %v1794_v2  ;;  %1665 = vset.pattern.permute.xlu1 %v1794_v2  ;;  %v1845_v3 = vld [vmem:[%s2442_s0 + $0x8] sm:$0xff] }
   0x2   :  { %42 = vperm.xlu0 %1667, %v1831_v0   ;;  %36 = vperm.xlu1 %1665, %v1836_v1   ;;  %v1704_v4 = vld [vmem:[%s2443_s1 + $0x78] sm:$0xff]   ;;  %v1706_v8 = vld [vmem:[%s2443_s1 + $0x70] sm:$0xff]   ;;  %v1708_v10 = vld [vmem:[%s2443_s1 + $0x68] sm:$0xff]  }
   0x3   :  { %v1855_v6 = vld [vmem:[%s2442_s0 + $0x18] sm:$0xff]  ;;  %1431 = vmatprep.subr.bf16.mxu0 %v1704_v4  ;;  %v1707_v9 = vld [vmem:[%s2443_s1 + $0x30] sm:$0xff]   ;;  %v1709_v12 = vld [vmem:[%s2443_s1 + $0x28] sm:$0xff]  }
   0x4   :  { %v1705_v7 = vld [vmem:[%s2443_s1 + $0x38] sm:$0xff]   ;;  %v1710_v13 = vld [vmem:[%s2443_s1 + $0x60] sm:$0xff]   ;;  %v1719_v19 = vld [vmem:[%s2443_s1 + $0xf0] sm:$0xff]  }
   0x5   :  { %1432 = vmatpush3.bf16.msra.mxu0 %v1705_v7  ;;  %v1711_v14 = vld [vmem:[%s2443_s1 + $0x20] sm:$0xff]   ;;  %v1715_v16 = vld [vmem:[%s2443_s1 + $0xf8] sm:$0xff]   ;;  %v1714_v21 = vld [vmem:[%s2443_s1 + $0x50] sm:$0xff]  }
   0x6   :  { %1671 = vset.pattern.permute.xlu0 %v1795_v5  ;;  %39 = vperm.xlu1 %1665, %v1845_v3   ;;  %v1889_v15 = vld [vmem:[%s2442_s0 + $0x20] sm:$0xff]  ;;  %v1712_v17 = vld [vmem:[%s2443_s1 + $0x58] sm:$0xff]   ;;  %v1915_v22 = vld [vmem:[%s2442_s0 + $0x28] sm:$0xff] }
   0x7   :  { %309 = vperm.xlu0 %1671, %v1836_v1   ;;  %1433 = vmatprep.subr.bf16.mxu0 %v1706_v8  ;;  %v1717_v18 = vld [vmem:[%s2443_s1 + $0xb8] sm:$0xff]   ;;  %v1721_v23 = vld [vmem:[%s2443_s1 + $0xb0] sm:$0xff]   ;;  %v1723_v24 = vld [vmem:[%s2443_s1 + $0xe8] sm:$0xff]  }
   0x8   :  { %1489 = vmatprep.subr.bf16.mxu1 %v1715_v16  ;;  %v1713_v20 = vld [vmem:[%s2443_s1 + $0x18] sm:$0xff]   ;;  %v1716_v25 = vld [vmem:[%s2443_s1 + $0x10] sm:$0xff]   ;;  %v1718_v26 = vld [vmem:[%s2443_s1 + $0x48] sm:$0xff]  }
   0x9   :  { %1434 = vmatpush3.bf16.msra.mxu0 %v1707_v9  ;;  %1490 = vmatpush3.bf16.msra.mxu1 %v1717_v18  ;;  %v1725_v27 = vld [vmem:[%s2443_s1 + $0xa8] sm:$0xff]   ;;  %v1938_v28 = vld [vmem:[%s2442_s0 + $0x40] sm:$0xff]  ;;  %v1954_v32 = vld [vmem:[%s2442_s0 + $0x58] sm:$0xff] }
   0xa   :  { %1666 = vset.pattern.permute.xlu1 %v1796_v11  ;;  %1435 = vmatprep.subr.bf16.mxu0 %v1708_v10  ;;  %v1726_v29 = vld [vmem:[%s2443_s1 + $0xe0] sm:$0xff]   ;;  %v1720_v30 = vld [vmem:[%s2443_s1 + $0x8] sm:$0xff]   ;;  %v1728_v34 = vld [vmem:[%s2443_s1 + $0xd8] sm:$0xff]  }
   0xb   :  { %318 = vperm.xlu0 %1671, %v1855_v6   ;;  %136 = vperm.xlu1 %1666, %v1855_v6   ;;  %v1722_v31 = vld [vmem:[%s2443_s1 + $0x40] sm:$0xff]   ;;  %v1729_v36 = vld [vmem:[%s2443_s1 + $0x98] sm:$0xff]   ;;  %v1730_v37 = vld [vmem:[%s2443_s1 + $0xd0] sm:$0xff]  }
   0xc   :  { %1491 = vmatprep.subr.bf16.mxu1 %v1719_v19  ;;  %v1727_v33 = vld [vmem:[%s2443_s1 + $0xa0] sm:$0xff]   ;;  %v1731_v38 = vld [vmem:[%s2443_s1 + $0x90] sm:$0xff]   ;;  %v1732_v39 = vld [vmem:[%s2443_s1 + $0xc8] sm:$0xff]  }
   0xd   :  { %1436 = vmatpush3.bf16.msra.mxu0 %v1709_v12  ;;  %1492 = vmatpush3.bf16.msra.mxu1 %v1721_v23  ;;  %v1724_v35 = vld [vmem:[%s2443_s1] sm:$0xff]   ;;  %v1988_v41 = vld [vmem:[%s2442_s0 + $0x30] sm:$0xff] }
   0xe   :  { %1437 = vmatprep.subr.bf16.mxu0 %v1710_v13  ;;  %1493 = vmatprep.subr.bf16.mxu1 %v1723_v24 }
   0xf   :  { %1677 = vset.pattern.permute.xlu0 %v1796_v11  ;;  %1668 = vset.pattern.permute.xlu1 %v1794_v2 }
  0x10   :  { %127 = vperm.xlu0 %1677, %v1836_v1   ;;  %45 = vperm.xlu1 %1668, %v1855_v6  }
  0x11   :  { %1438 = vmatpush3.bf16.msra.mxu0 %v1711_v14  ;;  %1494 = vmatpush3.bf16.msra.mxu1 %v1725_v27 }
  0x12   :  { %1439 = vmatprep.subr.bf16.mxu0 %v1712_v17  ;;  %1495 = vmatprep.subr.bf16.mxu1 %v1726_v29 }
  0x14   :  { %130 = vperm.xlu0 %1677, %v1845_v3   ;;  %1669 = vset.pattern.permute.xlu1 %v1796_v11 }
  0x15   :  { %139 = vperm.xlu1 %1669, %v1889_v15   ;;  %1440 = vmatpush3.bf16.msra.mxu0 %v1713_v20 }
  0x16   :  { %1441 = vmatprep.subr.bf16.mxu0 %v1714_v21  ;;  %1496 = vmatpush3.bf16.msra.mxu1 %v1727_v33 }
  0x17   :  { %1497 = vmatprep.subr.bf16.mxu1 %v1728_v34 }
  0x18   :  { %133 = vperm.xlu0 %1677, %v1831_v0  }
  0x19   :  { %1670 = vset.pattern.permute.xlu1 %v1794_v2  ;;  %1442 = vmatpush3.bf16.msra.mxu0 %v1716_v25 }
  0x1a   :  { %48 = vperm.xlu1 %1670, %v1889_v15   ;;  %1443 = vmatprep.subr.bf16.mxu0 %v1718_v26 }
  0x1b   :  { %1498 = vmatpush3.bf16.msra.mxu1 %v1729_v36 }
  0x1c   :  { %142 = vperm.xlu0 %1677, %v1915_v22   ;;  %1499 = vmatprep.subr.bf16.mxu1 %v1730_v37 }
  0x1d   :  { %1444 = vmatpush3.bf16.msra.mxu0 %v1720_v30 }
  0x1e   :  { %51 = vperm.xlu1 %1670, %v1915_v22   ;;  %1445 = vmatprep.subr.bf16.mxu0 %v1722_v31 }
  0x20   :  { %151 = vperm.xlu0 %1677, %v1938_v28  }
  0x21   :  { %1446 = vmatpush3.bf16.msra.mxu0 %v1724_v35 }
  0x22   :  { %1672 = vset.pattern.permute.xlu1 %v1795_v5 }
  0x23   :  { %312 = vperm.xlu1 %1672, %v1845_v3  }
  0x24   :  { %160 = vperm.xlu0 %1677, %v1954_v32  }
  0x27   :  { %1673 = vset.pattern.permute.xlu1 %v1797_v40 }
  0x28   :  { %1684 = vset.pattern.permute.xlu0 %v1797_v40  ;;  %218 = vperm.xlu1 %1673, %v1836_v1  }
  0x29   :  { %221 = vperm.xlu0 %1684, %v1845_v3  }
  0x2a   :  { %9 = vsyncpa [#allocation3], 0  ;;  %1500 = vmatpush3.bf16.msra.mxu1 %v1731_v38  ;;  %v1733_v42 = vld [vmem:[%s2443_s1 + $0x88] sm:$0xff]   ;;  %v1734_v43 = vld [vmem:[%s2443_s1 + $0xc0] sm:$0xff]   ;;  %v1798_v48 = vmov 4   ;;  %v1799_v51 = vmov 0.0   ;;  %v33_v58 = vlaneseq }
  0x2b   :  { %1501 = vmatprep.subr.bf16.mxu1 %v1732_v39  ;;  %v26_v44 = vld [vmem:[%s2442_s0 + $0x38] sm:$0xff]  ;;  %v1735_v45 = vld [vmem:[%s2443_s1 + $0x80] sm:$0xff]   ;;  %v2011_v46 = vld [vmem:[%s2442_s0 + $0x48] sm:$0xff]  ;;  %1573 = vmatprep.subr.bf16.mxu0 %v1799_v51  ;;  %s1802_s15 = smov [#allocation2]  }
  0x2c   :  { %1674 = vset.pattern.permute.xlu1 %v1796_v11  ;;  %v2019_v47 = vld [vmem:[%s2442_s0 + $0x60] sm:$0xff]  ;;  %v2042_v49 = vld [vmem:[%s2442_s0 + $0x68] sm:$0xff]  ;;  %v2052_v50 = vld [vmem:[%s2442_s0 + $0x50] sm:$0xff]  ;;  %v2079_v61 = vand.u32 127, %v33_v58  ;;  %s1240_s16 = sshll.u32 %s1802_s15, 4  ;;  %s1241_s16 = int_to_ptr.vmem [resolvable:$true] %s1240_s16 }
  0x2d   :  { %230 = vperm.xlu0 %1684, %v1889_v15   ;;  %145 = vperm.xlu1 %1674, %v1988_v41   ;;  %v1737_v7 = vld [vmem:[%s2443_s1 + $0x130] sm:$0xff]   ;;  %v1738_v10 = vld [vmem:[%s2443_s1 + $0x128] sm:$0xff]   ;;  %v1739_v12 = vld [vmem:[%s2443_s1 + $0x120] sm:$0xff]   ;;  %s1772_s17 = scalar_lea.vmem %s1241_s16, 128  ;;  %p1777_p1 = scmp.lt.s32.totalorder %s1241_s16, %s1241_s16 }
  0x2e   :  { %1502 = vmatpush3.bf16.msra.mxu1 %v1733_v42  ;;  %v1741_v18 = vld [vmem:[%s2443_s1 + $0x110] sm:$0xff]   ;;  %v1742_v21 = vld [vmem:[%s2443_s1 + $0x108] sm:$0xff]   ;;  %p1773_p0 = scmp.ne.s32.totalorder %s1241_s16, %s1772_s17  ;;  %p1778_p2 = scmp.lt.s32.totalorder %s1772_s17, %s1772_s17 }
  0x2f   :  { %1503 = vmatprep.subr.bf16.mxu1 %v1734_v43 }
  0x30   :  { %p1779_p3 = por %p1778_p2, %p1777_p1 }
  0x31   :  { %239 = vperm.xlu0 %1684, %v26_v44   ;;  %148 = vperm.xlu1 %1674, %v26_v44  }
  0x32   :  { %1504 = vmatpush3.bf16.msra.mxu1 %v1735_v45  ;;  %p1780_p4 = pnand %p1779_p3, %p1773_p0 }
  0x33   :  { %1640 = vmatprep.subr.bf16.mxu1 %v1799_v51 }
  0x35   :  { %1688 = vset.pattern.permute.xlu0 %v1794_v2  ;;  %1675 = vset.pattern.permute.xlu1 %v1794_v2 }
  0x36   :  { %54 = vperm.xlu0 %1688, %v1988_v41   ;;  %57 = vperm.xlu1 %1675, %v26_v44  }
  0x3a   :  { %1676 = vset.pattern.permute.xlu1 %v1795_v5  ;;  %63 = vperm.xlu0 %1688, %v2011_v46  }
  0x3b   :  { %315 = vperm.xlu1 %1676, %v1831_v0  }
  0x3e   :  { %72 = vperm.xlu0 %1688, %v2019_v47  }
  0x3f   :  { %1678 = vset.pattern.permute.xlu1 %v1797_v40 }
  0x40   :  { %224 = vperm.xlu1 %1678, %v1831_v0  }
  0x42   :  { %1690 = vset.pattern.permute.xlu0 %v1795_v5 }
  0x43   :  { %327 = vperm.xlu0 %1690, %v1988_v41  }
  0x44   :  { %227 = vperm.xlu1 %1678, %v1855_v6  }
  0x47   :  { %336 = vperm.xlu0 %1690, %v2011_v46  }
  0x48   :  { %1679 = vset.pattern.permute.xlu1 %v1796_v11 }
  0x49   :  { %154 = vperm.xlu1 %1679, %v2011_v46  }
  0x4b   :  { %342 = vperm.xlu0 %1690, %v1954_v32  }
  0x4d   :  { %1680 = vset.pattern.permute.xlu1 %v1794_v2 }
  0x4e   :  { %60 = vperm.xlu1 %1680, %v1938_v28  }
  0x4f   :  { %1696 = vset.pattern.permute.xlu0 %v1798_v48 }
  0x50   :  { %400 = vperm.xlu0 %1696, %v1836_v1   ;;  %v1800_v1 = vmov 1.0|1.0  }
  0x52   :  { %1681 = vset.pattern.permute.xlu1 %v1795_v5 }
  0x53   :  { %321 = vperm.xlu1 %1681, %v1889_v15  }
  0x54   :  { %406 = vperm.xlu0 %1696, %v1831_v0   ;;  %v2089_v0 = vld [vmem:[%s2443_s1 + $0x138] sm:$0xff]  }
  0x57   :  { %324 = vperm.xlu1 %1681, %v1915_v22  }
  0x58   :  { %1700 = vset.pattern.permute.xlu0 %v1795_v5 }
  0x59   :  { %348 = vperm.xlu0 %1700, %v2042_v49  }
  0x5b   :  { %1682 = vset.pattern.permute.xlu1 %v1797_v40 }
  0x5c   :  { %233 = vperm.xlu1 %1682, %v1915_v22  }
  0x5d   :  { %1702 = vset.pattern.permute.xlu0 %v1798_v48 }
  0x5e   :  { %412 = vperm.xlu0 %1702, %v1889_v15   ;;  %v1740_v15 = vld [vmem:[%s2443_s1 + $0x118] sm:$0xff]  }
  0x60   :  { %1683 = vset.pattern.permute.xlu1 %v1796_v11 }
  0x61   :  { %157 = vperm.xlu1 %1683, %v2052_v50  }
  0x62   :  { %427 = vperm.xlu0 %1702, %v2011_v46  }
  0x65   :  { %1685 = vset.pattern.permute.xlu1 %v1794_v2 }
  0x66   :  { %66 = vperm.xlu1 %1685, %v2052_v50   ;;  %421 = vperm.xlu0 %1702, %v26_v44  }
  0x6a   :  { %69 = vperm.xlu1 %1685, %v1954_v32   ;;  %433 = vperm.xlu0 %1702, %v1954_v32  }
  0x6e   :  { %1686 = vset.pattern.permute.xlu1 %v1795_v5  ;;  %439 = vperm.xlu0 %1702, %v2042_v49  }
  0x6f   :  { %330 = vperm.xlu1 %1686, %v26_v44  }
  0x73   :  { %1687 = vset.pattern.permute.xlu1 %v1797_v40 }
  0x74   :  { %236 = vperm.xlu1 %1687, %v1988_v41  }
  0x78   :  { %1689 = vset.pattern.permute.xlu1 %v1796_v11 }
  0x79   :  { %163 = vperm.xlu1 %1689, %v2019_v47  }
  0x7d   :  { %166 = vperm.xlu1 %1689, %v2042_v49   ;;  %v37_v52 = vpop.permute.xlu1 %36  ;;  %v43_v53 = vpop.permute.xlu0 %42 }
  0x7e   :  { %vm77_vm3 = vcmp.eq.s32.totalorder %v37_v52, %v2079_v61  ;;  %vm79_vm9 = vcmp.eq.s32.totalorder %v43_v53, %v2079_v61 }
  0x81   :  { %1691 = vset.pattern.permute.xlu1 %v1794_v2  ;;  %v40_v54 = vpop.permute.xlu1 %39 }
  0x82   :  { %75 = vperm.xlu1 %1691, %v2042_v49   ;;  %v310_v55 = vpop.permute.xlu0 %309  ;;  %vm78_vm1 = vcmp.eq.s32.totalorder %v40_v54, %v2079_v61 }
  0x83   :  { %vm1361_vm5 = vmpackc.low %vm78_vm1, %vm77_vm3  ;;  %vm350_vm15 = vcmp.eq.s32.totalorder %v310_v55, %v2079_v61 }
  0x86   :  { %1692 = vset.pattern.permute.xlu1 %v1795_v5  ;;  %v137_v56 = vpop.permute.xlu1 %136  ;;  %v2074_v57 = vpop.permute.xlu0 %318 }
  0x87   :  { %333 = vperm.xlu1 %1692, %v1938_v28   ;;  %vm171_vm6 = vcmp.eq.s32.totalorder %v137_v56, %v2079_v61 }
  0x8b   :  { %v128_v59 = vpop.permute.xlu0 %127  ;;  %1693 = vset.pattern.permute.xlu1 %v1797_v40  ;;  %v46_v60 = vpop.permute.xlu1 %45 }
  0x8c   :  { %242 = vperm.xlu1 %1693, %v1938_v28   ;;  %vm168_vm0 = vcmp.eq.s32.totalorder %v128_v59, %v2079_v61  ;;  %vm80_vm10 = vcmp.eq.s32.totalorder %v46_v60, %v2079_v61 }
  0x8d   :  { %vm1365_vm12 = vmpackc.low %vm80_vm10, %vm79_vm9 }
  0x8f   :  { %v131_v62 = vpop.permute.xlu0 %130 }
  0x90   :  { %vm169_vm2 = vcmp.eq.s32.totalorder %v131_v62, %v2079_v61  ;;  %245 = vperm.xlu1 %1693, %v2011_v46   ;;  %v140_v63 = vpop.permute.xlu1 %139 }
  0x91   :  { %vm1359_vm4 = vmpackc.low %vm169_vm2, %vm168_vm0  ;;  %vm172_vm13 = vcmp.eq.s32.totalorder %v140_v63, %v2079_v61 }
  0x92   :  { %1360 = vmatprep.mubr.msk.bf16.mxu0 %vm1359_vm4, %v1800_v1 }
  0x93   :  { %v134_v4 = vpop.permute.xlu0 %133  ;;  %1362 = vmatmul.mubr.msk.bf16.vlgmr.msra.gmra.mxu0 %vm1361_vm5, %v1800_v1 }
  0x94   :  { %vm170_vm7 = vcmp.eq.s32.totalorder %v134_v4, %v2079_v61  ;;  %1694 = vset.pattern.permute.xlu1 %v1798_v48  ;;  %1574 = vmatpush3.bf16.msra.mxu0 %v2089_v0 }
  0x95   :  { %vm1363_vm8 = vmpackc.low %vm171_vm6, %vm170_vm7  ;;  %403 = vperm.xlu1 %1694, %v1845_v3   ;;  %v49_v8 = vpop.permute.xlu1 %48  ;;  %1575 = vmatprep.subr.bf16.mxu0 %v1799_v51 }
  0x96   :  { %1364 = vmatprep.mubr.msk.bf16.mxu0 %vm1363_vm8, %v1800_v1  ;;  %vm81_vm3 = vcmp.eq.s32.totalorder %v49_v8, %v2079_v61 }
  0x97   :  { %v143_v9 = vpop.permute.xlu0 %142 }
  0x98   :  { %vm173_vm11 = vcmp.eq.s32.totalorder %v143_v9, %v2079_v61  ;;  %1576 = vmatpush3.bf16.msra.mxu0 %v1737_v7 }
  0x99   :  { %1695 = vset.pattern.permute.xlu1 %v1795_v5  ;;  %v52_v3 = vpop.permute.xlu1 %51  ;;  %1577 = vmatprep.subr.bf16.mxu0 %v1799_v51  ;;  %vm1367_vm14 = vmpackc.low %vm173_vm11, %vm172_vm13 }
  0x9a   :  { %339 = vperm.xlu1 %1695, %v2052_v50   ;;  %vm82_vm0 = vcmp.eq.s32.totalorder %v52_v3, %v2079_v61 }
  0x9b   :  { %1366 = vmatmul.mubr.msk.bf16.gmra.mxu0 %vm1365_vm12, %v1800_v1  ;;  %v2115_v11 = vpop.permute.xlu0 %151  ;;  %vm1369_vm4 = vmpackc.low %vm82_vm0, %vm81_vm3 }
  0x9c   :  { %1368 = vmatprep.mubr.msk.bf16.mxu0 %vm1367_vm14, %v1800_v1  ;;  %1578 = vmatpush3.bf16.msra.mxu0 %v1738_v10  ;;  %vm353_vm14 = vcmp.eq.s32.totalorder %v2074_v57, %v2079_v61 }
  0x9d   :  { %1579 = vmatprep.subr.bf16.mxu0 %v1799_v51 }
  0x9e   :  { %1697 = vset.pattern.permute.xlu1 %v1797_v40  ;;  %v313_v13 = vpop.permute.xlu1 %312 }
  0x9f   :  { %vm351_vm1 = vcmp.eq.s32.totalorder %v313_v13, %v2079_v61  ;;  %248 = vperm.xlu1 %1697, %v2052_v50   ;;  %v2127_v14 = vpop.permute.xlu0 %160 }
  0xa0   :  { %vm1387_vm2 = vmpackc.low %vm351_vm1, %vm350_vm15  ;;  %1580 = vmatpush3.bf16.msra.mxu0 %v1739_v12 }
  0xa1   :  { %1388 = vmatprep.mubr.msk.bf16.mxu1 %vm1387_vm2, %v1800_v1  ;;  %1581 = vmatprep.subr.bf16.mxu0 %v1799_v51 }
  0xa3   :  { %251 = vperm.xlu1 %1697, %v1954_v32   ;;  %1370 = vmatmul.mubr.msk.bf16.gmra.mxu0 %vm1369_vm4, %v1800_v1  ;;  %v219_v16 = vpop.permute.xlu1 %218  ;;  %vm176_vm4 = vcmp.eq.s32.totalorder %v2115_v11, %v2079_v61 }
  0xa4   :  { %vm259_vm5 = vcmp.eq.s32.totalorder %v219_v16, %v2079_v61  ;;  %v222_v17 = vpop.permute.xlu0 %221  ;;  %1582 = vmatpush3.bf16.msra.mxu0 %v1740_v15 }
  0xa5   :  { %vm260_vm6 = vcmp.eq.s32.totalorder %v222_v17, %v2079_v61  ;;  %1583 = vmatprep.subr.bf16.mxu0 %v1799_v51 }
  0xa6   :  { %vm1389_vm7 = vmpackc.low %vm260_vm6, %vm259_vm5 }
  0xa7   :  { %1698 = vset.pattern.permute.xlu1 %v1798_v48  ;;  %1390 = vmatmul.mubr.msk.bf16.vlgmr.msra.gmra.mxu1 %vm1389_vm7, %v1800_v1 }
  0xa8   :  { %409 = vperm.xlu1 %1698, %v1855_v6   ;;  %v146_v19 = vpop.permute.xlu1 %145  ;;  %v2146_v20 = vpop.permute.xlu0 %230  ;;  %1648 = vmatpush3.bf16.msra.mxu1 %v2089_v0  ;;  %v1743_v6 = vld [vmem:[%s2443_s1 + $0x100] sm:$0xff]  }
  0xa9   :  { %1584 = vmatpush3.bf16.msra.mxu0 %v1741_v18  ;;  %1641 = vmatprep.subr.bf16.mxu1 %v1799_v51  ;;  %vm174_vm8 = vcmp.eq.s32.totalorder %v146_v19, %v2079_v61 }
  0xaa   :  { %1585 = vmatprep.subr.bf16.mxu0 %v1799_v51 }
  0xac   :  { %1699 = vset.pattern.permute.xlu1 %v1795_v5  ;;  %v149_v23 = vpop.permute.xlu1 %148  ;;  %v2155_v24 = vpop.permute.xlu0 %239  ;;  %1649 = vmatpush3.bf16.msra.mxu1 %v1737_v7 }
  0xad   :  { %vm175_vm9 = vcmp.eq.s32.totalorder %v149_v23, %v2079_v61  ;;  %345 = vperm.xlu1 %1699, %v2019_v47   ;;  %1586 = vmatpush3.bf16.msra.mxu0 %v1742_v21 }
  0xae   :  { %vm1371_vm10 = vmpackc.low %vm175_vm9, %vm174_vm8  ;;  %1587 = vmatprep.subr.bf16.mxu0 %v1799_v51  ;;  %1642 = vmatprep.subr.bf16.mxu1 %v1799_v51 }
  0xaf   :  { %1372 = vmatprep.mubr.msk.bf16.mxu0 %vm1371_vm10, %v1800_v1 }
  0xb0   :  { %1650 = vmatpush3.bf16.msra.mxu1 %v1738_v10 }
  0xb1   :  { %v55_v5 = vpop.permute.xlu0 %54  ;;  %1701 = vset.pattern.permute.xlu1 %v1797_v40  ;;  %v58_v25 = vpop.permute.xlu1 %57  ;;  %1588 = vmatpush3.bf16.msra.mxu0 %v1743_v6 }
  0xb2   :  { %vm83_vm11 = vcmp.eq.s32.totalorder %v55_v5, %v2079_v61  ;;  %vm84_vm12 = vcmp.eq.s32.totalorder %v58_v25, %v2079_v61  ;;  %254 = vperm.xlu1 %1701, %v2019_v47   ;;  %1643 = vmatprep.subr.bf16.mxu1 %v1799_v51 }
  0xb3   :  { %vm1373_vm13 = vmpackc.low %vm84_vm12, %vm83_vm11 }
  0xb4   :  { %1374 = vmatmul.mubr.msk.bf16.gmra.mxu0 %vm1373_vm13, %v1800_v1  ;;  %1651 = vmatpush3.bf16.msra.mxu1 %v1739_v12  ;;  %vm263_vm13 = vcmp.eq.s32.totalorder %v2146_v20, %v2079_v61 }
  0xb5   :  { %1644 = vmatprep.subr.bf16.mxu1 %v1799_v51 }
  0xb6   :  { %257 = vperm.xlu1 %1701, %v2042_v49   ;;  %v316_v26 = vpop.permute.xlu1 %315 }
  0xb7   :  { %vm352_vm15 = vcmp.eq.s32.totalorder %v316_v26, %v2079_v61 }
  0xb8   :  { %vm1391_vm0 = vmpackc.low %vm353_vm14, %vm352_vm15  ;;  %1652 = vmatpush3.bf16.msra.mxu1 %v1740_v15 }
  0xb9   :  { %1392 = vmatprep.mubr.msk.bf16.mxu1 %vm1391_vm0, %v1800_v1  ;;  %1645 = vmatprep.subr.bf16.mxu1 %v1799_v51  ;;  %vm179_vm0 = vcmp.eq.s32.totalorder %v2127_v14, %v2079_v61 }
  0xba   :  { %1703 = vset.pattern.permute.xlu1 %v1798_v48 }
  0xbb   :  { %415 = vperm.xlu1 %1703, %v1915_v22   ;;  %v225_v27 = vpop.permute.xlu1 %224 }
  0xbc   :  { %1653 = vmatpush3.bf16.msra.mxu1 %v1741_v18  ;;  %vm261_vm1 = vcmp.eq.s32.totalorder %v225_v27, %v2079_v61 }
  0xbd   :  { %1646 = vmatprep.subr.bf16.mxu1 %v1799_v51 }
  0xbf   :  { %424 = vperm.xlu1 %1703, %v1938_v28   ;;  %v228_v29 = vpop.permute.xlu1 %227  ;;  %v64_v28 = vpop.permute.xlu0 %63 }
  0xc0   :  { %vm262_vm2 = vcmp.eq.s32.totalorder %v228_v29, %v2079_v61  ;;  %1654 = vmatpush3.bf16.msra.mxu1 %v1742_v21  ;;  %vm86_vm7 = vcmp.eq.s32.totalorder %v64_v28, %v2079_v61 }
  0xc1   :  { %vm1393_vm3 = vmpackc.low %vm262_vm2, %vm261_vm1  ;;  %1647 = vmatprep.subr.bf16.mxu1 %v1799_v51 }
  0xc2   :  { %1394 = vmatmul.mubr.msk.bf16.gmra.mxu1 %vm1393_vm3, %v1800_v1 }
  0xc3   :  { %418 = vperm.xlu1 %1703, %v1988_v41   ;;  %v73_v35 = vpop.permute.xlu0 %72 }
  0xc4   :  { %v155_v22 = vpop.permute.xlu1 %154  ;;  %1655 = vmatpush3.bf16.msra.mxu1 %v1743_v6 }
  0xc5   :  { %vm177_vm5 = vcmp.eq.s32.totalorder %v155_v22, %v2079_v61  ;;  %1617 = vmatprep.subr.mxu1 %v1799_v51 }
  0xc6   :  { %vm1375_vm6 = vmpackc.low %vm177_vm5, %vm176_vm4 }
  0xc7   :  { %430 = vperm.xlu1 %1703, %v2052_v50   ;;  %1376 = vmatprep.mubr.msk.bf16.mxu0 %vm1375_vm6, %v1800_v1  ;;  %v328_v38 = vpop.permute.xlu0 %327 }
  0xc8   :  { %vm356_vm6 = vcmp.eq.s32.totalorder %v328_v38, %v2079_v61 }
  0xc9   :  { %v61_v30 = vpop.permute.xlu1 %60 }
  0xca   :  { %vm85_vm8 = vcmp.eq.s32.totalorder %v61_v30, %v2079_v61 }
  0xcb   :  { %vm1377_vm9 = vmpackc.low %vm86_vm7, %vm85_vm8  ;;  %436 = vperm.xlu1 %1703, %v2019_v47   ;;  %v337_v44 = vpop.permute.xlu0 %336 }
  0xcc   :  { %1378 = vmatmul.mubr.msk.bf16.gmra.mxu0 %vm1377_vm9, %v1800_v1  ;;  %vm266_vm9 = vcmp.eq.s32.totalorder %v2155_v24, %v2079_v61 }
  0xce   :  { %v322_v31 = vpop.permute.xlu1 %321 }
  0xcf   :  { %vm354_vm10 = vcmp.eq.s32.totalorder %v322_v31, %v2079_v61  ;;  %v343_v46 = vpop.permute.xlu0 %342 }
  0xd2   :  { %v325_v32 = vpop.permute.xlu1 %324 }
  0xd3   :  { %vm355_vm11 = vcmp.eq.s32.totalorder %v325_v32, %v2079_v61  ;;  %v401_v49 = vpop.permute.xlu0 %400 }
  0xd4   :  { %vm1395_vm12 = vmpackc.low %vm355_vm11, %vm354_vm10 }
  0xd5   :  { %1396 = vmatprep.mubr.msk.bf16.mxu1 %vm1395_vm12, %v1800_v1 }
  0xd7   :  { %v234_v33 = vpop.permute.xlu1 %233  ;;  %v407_v55 = vpop.permute.xlu0 %406 }
  0xd8   :  { %vm264_vm14 = vcmp.eq.s32.totalorder %v234_v33, %v2079_v61 }
  0xd9   :  { %vm1397_vm15 = vmpackc.low %vm264_vm14, %vm263_vm13 }
  0xda   :  { %1398 = vmatmul.mubr.msk.bf16.gmra.mxu1 %vm1397_vm15, %v1800_v1  ;;  %vm89_vm15 = vcmp.eq.s32.totalorder %v73_v35, %v2079_v61 }
  0xdb   :  { %v349_v57 = vpop.permute.xlu0 %348 }
  0xdc   :  { %v158_v34 = vpop.permute.xlu1 %157 }
  0xdd   :  { %vm178_vm1 = vcmp.eq.s32.totalorder %v158_v34, %v2079_v61 }
  0xde   :  { %vm1379_vm2 = vmpackc.low %vm179_vm0, %vm178_vm1 }
  0xdf   :  { %1380 = vmatprep.mubr.msk.bf16.mxu0 %vm1379_vm2, %v1800_v1  ;;  %vm359_vm2 = vcmp.eq.s32.totalorder %v337_v44, %v2079_v61  ;;  %v413_v62 = vpop.permute.xlu0 %412  ;;  %v1147_v44 = vld [vmem:[%s2445_s3 + $0x20] sm:$0xff] }
  0xe1   :  { %v67_v36 = vpop.permute.xlu1 %66 }
  0xe2   :  { %vm87_vm3 = vcmp.eq.s32.totalorder %v67_v36, %v2079_v61 }
  0xe3   :  { %v428_v0 = vpop.permute.xlu0 %427 }
  0xe5   :  { %v70_v37 = vpop.permute.xlu1 %69 }
  0xe6   :  { %vm88_vm4 = vcmp.eq.s32.totalorder %v70_v37, %v2079_v61  ;;  %v1152_v37 = vld [vmem:[%s2445_s3 + $0x48] sm:$0xff] }
  0xe7   :  { %vm1381_vm5 = vmpackc.low %vm88_vm4, %vm87_vm3  ;;  %vm1801_vm3 = vmmov 0   ;;  %v422_v8 = vpop.permute.xlu0 %421 }
  0xe8   :  { %1382 = vmatmul.mubr.msk.bf16.gmra.mxu0 %vm1381_vm5, %v1800_v1 }
  0xea   :  { %v331_v39 = vpop.permute.xlu1 %330 }
  0xeb   :  { %vm357_vm7 = vcmp.eq.s32.totalorder %v331_v39, %v2079_v61  ;;  %v434_v10 = vpop.permute.xlu0 %433 }
  0xec   :  { %vm1399_vm8 = vmpackc.low %vm357_vm7, %vm356_vm6 }
  0xed   :  { %1400 = vmatprep.mubr.msk.bf16.mxu1 %vm1399_vm8, %v1800_v1 }
  0xef   :  { %v237_v40 = vpop.permute.xlu1 %236  ;;  %v440_v12 = vpop.permute.xlu0 %439 }
  0xf0   :  { %vm265_vm10 = vcmp.eq.s32.totalorder %v237_v40, %v2079_v61  ;;  %v1151_v40 = vld [vmem:[%s2445_s3 + $0x40] sm:$0xff] }
  0xf1   :  { %vm1401_vm11 = vmpackc.low %vm266_vm9, %vm265_vm10  ;;  %vm441_vm9 = vcmp.eq.s32.totalorder %v401_v49, %v2079_v61  ;;  %v1143_v49 = vld [vmem:[%s2445_s3] sm:$0xff] }
  0xf2   :  { %1402 = vmatmul.mubr.msk.bf16.gmra.mxu1 %vm1401_vm11, %v1800_v1 }
  0xf4   :  { %v164_v41 = vpop.permute.xlu1 %163 }
  0xf5   :  { %vm180_vm12 = vcmp.eq.s32.totalorder %v164_v41, %v2079_v61  ;;  %v1150_v41 = vld [vmem:[%s2445_s3 + $0x38] sm:$0xff] }
  0xf8   :  { %v167_v42 = vpop.permute.xlu1 %166 }
  0xf9   :  { %vm181_vm13 = vcmp.eq.s32.totalorder %v167_v42, %v2079_v61  ;;  %v1149_v42 = vld [vmem:[%s2445_s3 + $0x30] sm:$0xff] }
  0xfa   :  { %vm1383_vm14 = vmpackc.low %vm181_vm13, %vm180_vm12  ;;  %vm361_vm12 = vcmp.eq.s32.totalorder %v343_v46, %v2079_v61  ;;  %v1145_v46 = vld [vmem:[%s2445_s3 + $0x10] sm:$0xff] }
  0xfb   :  { %1384 = vmatprep.mubr.msk.bf16.mxu0 %vm1383_vm14, %v1800_v1 }
  0xfd   :  { %v76_v43 = vpop.permute.xlu1 %75 }
  0xfe   :  { %vm90_vm0 = vcmp.eq.s32.totalorder %v76_v43, %v2079_v61  ;;  %v1148_v43 = vld [vmem:[%s2445_s3 + $0x28] sm:$0xff] }
  0xff   :  { %vm1385_vm1 = vmpackc.low %vm90_vm0, %vm89_vm15 }
 0x100   :  { %1386 = vmatmul.mubr.msk.bf16.gmra.mxu0 %vm1385_vm1, %v1800_v1 }
 0x101   :  { %1589 = vmatprep.mubr.msk.bf16.mxu0 %vm1801_vm3, %v1799_v51 }
 0x102   :  { %v334_v45 = vpop.permute.xlu1 %333 }
 0x103   :  { %vm358_vm4 = vcmp.eq.s32.totalorder %v334_v45, %v2079_v61  ;;  %v1146_v45 = vld [vmem:[%s2445_s3 + $0x18] sm:$0xff] }
 0x104   :  { %vm1403_vm5 = vmpackc.low %vm359_vm2, %vm358_vm4  ;;  %vm443_vm2 = vcmp.eq.s32.totalorder %v407_v55, %v2079_v61 }
 0x105   :  { %1404 = vmatprep.mubr.msk.bf16.mxu1 %vm1403_vm5, %v1800_v1 }
 0x107   :  { %v243_v47 = vpop.permute.xlu1 %242 }
 0x108   :  { %vm267_vm6 = vcmp.eq.s32.totalorder %v243_v47, %v2079_v61 }
 0x10b   :  { %v246_v48 = vpop.permute.xlu1 %245 }
 0x10c   :  { %vm268_vm7 = vcmp.eq.s32.totalorder %v246_v48, %v2079_v61  ;;  %v1144_v48 = vld [vmem:[%s2445_s3 + $0x8] sm:$0xff] }
 0x10d   :  { %vm1405_vm8 = vmpackc.low %vm268_vm7, %vm267_vm6  ;;  %vm363_vm6 = vcmp.eq.s32.totalorder %v349_v57, %v2079_v61 }
 0x10e   :  { %1406 = vmatmul.mubr.msk.bf16.gmra.mxu1 %vm1405_vm8, %v1800_v1 }
 0x110   :  { %v404_v50 = vpop.permute.xlu1 %403 }
 0x111   :  { %vm442_vm10 = vcmp.eq.s32.totalorder %v404_v50, %v2079_v61 }
 0x112   :  { %vm1415_vm11 = vmpackc.low %vm442_vm10, %vm441_vm9 }
 0x113   :  { %1590 = vmatmul.mubr.msk.bf16.vlgmr.msra.gmra.mxu0 %vm1415_vm11, %v1800_v1 }
 0x114   :  { %1593 = vmatprep.mubr.msk.bf16.mxu0 %vm1801_vm3, %v1799_v51 }
 0x115   :  { %v340_v52 = vpop.permute.xlu1 %339 }
 0x116   :  { %vm360_vm13 = vcmp.eq.s32.totalorder %v340_v52, %v2079_v61 }
 0x117   :  { %vm1407_vm14 = vmpackc.low %vm361_vm12, %vm360_vm13  ;;  %vm445_vm12 = vcmp.eq.s32.totalorder %v413_v62, %v2079_v61 }
 0x118   :  { %1408 = vmatprep.mubr.msk.bf16.mxu1 %vm1407_vm14, %v1800_v1 }
 0x11a   :  { %v249_v53 = vpop.permute.xlu1 %248 }
 0x11b   :  { %vm269_vm15 = vcmp.eq.s32.totalorder %v249_v53, %v2079_v61 }
 0x11e   :  { %v252_v54 = vpop.permute.xlu1 %251 }
 0x11f   :  { %vm270_vm0 = vcmp.eq.s32.totalorder %v252_v54, %v2079_v61 }
 0x120   :  { %vm1409_vm1 = vmpackc.low %vm270_vm0, %vm269_vm15  ;;  %vm450_vm15 = vcmp.eq.s32.totalorder %v428_v0, %v2079_v61 }
 0x121   :  { %1410 = vmatmul.mubr.msk.bf16.gmra.mxu1 %vm1409_vm1, %v1800_v1 }
 0x123   :  { %v410_v56 = vpop.permute.xlu1 %409 }
 0x124   :  { %vm444_vm4 = vcmp.eq.s32.totalorder %v410_v56, %v2079_v61 }
 0x125   :  { %vm1417_vm5 = vmpackc.low %vm444_vm4, %vm443_vm2  ;;  %vm448_vm2 = vcmp.eq.s32.totalorder %v422_v8, %v2079_v61 }
 0x126   :  { %1594 = vmatmul.mubr.msk.bf16.gmra.mxu0 %vm1417_vm5, %v1800_v1 }
 0x127   :  { %1597 = vmatprep.mubr.msk.bf16.mxu0 %vm1801_vm3, %v1799_v51 }
 0x128   :  { %v346_v59 = vpop.permute.xlu1 %345 }
 0x129   :  { %vm362_vm7 = vcmp.eq.s32.totalorder %v346_v59, %v2079_v61 }
 0x12a   :  { %vm1411_vm8 = vmpackc.low %vm363_vm6, %vm362_vm7  ;;  %vm452_vm6 = vcmp.eq.s32.totalorder %v434_v10, %v2079_v61 }
 0x12b   :  { %1412 = vmatprep.mubr.msk.bf16.mxu1 %vm1411_vm8, %v1800_v1 }
 0x12d   :  { %v255_v60 = vpop.permute.xlu1 %254 }
 0x12e   :  { %vm271_vm9 = vcmp.eq.s32.totalorder %v255_v60, %v2079_v61 }
 0x131   :  { %v258_v63 = vpop.permute.xlu1 %257 }
 0x132   :  { %vm272_vm10 = vcmp.eq.s32.totalorder %v258_v63, %v2079_v61 }
 0x133   :  { %vm1413_vm11 = vmpackc.low %vm272_vm10, %vm271_vm9  ;;  %vm454_vm10 = vcmp.eq.s32.totalorder %v440_v12, %v2079_v61 }
 0x134   :  { %1414 = vmatmul.mubr.msk.bf16.gmra.mxu1 %vm1413_vm11, %v1800_v1 }
 0x135   :  { %1605 = vmatprep.mubr.msk.bf16.mxu1 %vm1801_vm3, %v1799_v51 }
 0x136   :  { %v416_v4 = vpop.permute.xlu1 %415 }
 0x137   :  { %vm446_vm13 = vcmp.eq.s32.totalorder %v416_v4, %v2079_v61 }
 0x138   :  { %vm1419_vm14 = vmpackc.low %vm446_vm13, %vm445_vm12 }
 0x139   :  { %1598 = vmatmul.mubr.msk.bf16.gmra.mxu0 %vm1419_vm14, %v1800_v1 }
 0x13a   :  { %v425_v7 = vpop.permute.xlu1 %424  ;;  %1601 = vmatprep.mubr.msk.bf16.mxu0 %vm1801_vm3, %v1799_v51 }
 0x13b   :  { %vm449_vm0 = vcmp.eq.s32.totalorder %v425_v7, %v2079_v61 }
 0x13c   :  { %vm1423_vm1 = vmpackc.low %vm450_vm15, %vm449_vm0 }
 0x13d   :  { %1606 = vmatmul.mubr.msk.bf16.vlgmr.msra.gmra.mxu1 %vm1423_vm1, %v1800_v1 }
 0x13e   :  { %v419_v9 = vpop.permute.xlu1 %418  ;;  %1609 = vmatprep.mubr.msk.bf16.mxu1 %vm1801_vm3, %v1799_v51  ;;  %1618 = vmatpush3.msra.mxu1 %v1152_v37 }
 0x13f   :  { %vm447_vm4 = vcmp.eq.s32.totalorder %v419_v9, %v2079_v61  ;;  %1619 = vmatprep.subr.mxu1 %v1799_v51 }
 0x140   :  { %vm1421_vm5 = vmpackc.low %vm448_vm2, %vm447_vm4  ;;  %1620 = vmatpush3.msra.mxu1 %v1151_v40  ;;  %vm1158_vm4 = vcmask 654336  }
 0x141   :  { %1602 = vmatmul.mubr.msk.bf16.gmra.mxu0 %vm1421_vm5, %v1800_v1  ;;  %1621 = vmatprep.subr.mxu1 %v1799_v51  ;;  %vm1232_vm5 = vcmask 64512  }
 0x142   :  { %v431_v3 = vpop.permute.xlu1 %430  ;;  %1622 = vmatpush3.msra.mxu1 %v1150_v41 }
 0x143   :  { %vm451_vm7 = vcmp.eq.s32.totalorder %v431_v3, %v2079_v61  ;;  %1623 = vmatprep.subr.mxu1 %v1799_v51 }
 0x144   :  { %vm1425_vm8 = vmpackc.low %vm452_vm6, %vm451_vm7  ;;  %1624 = vmatpush3.msra.mxu1 %v1149_v42 }
 0x145   :  { %1610 = vmatmul.mubr.msk.bf16.gmra.mxu1 %vm1425_vm8, %v1800_v1  ;;  %1625 = vmatprep.subr.mxu1 %v1799_v51 }
 0x146   :  { %v437_v11 = vpop.permute.xlu1 %436  ;;  %1613 = vmatprep.mubr.msk.bf16.mxu1 %vm1801_vm3, %v1799_v51  ;;  %1626 = vmatpush3.msra.mxu1 %v1148_v43 }
 0x147   :  { %vm453_vm9 = vcmp.eq.s32.totalorder %v437_v11, %v2079_v61  ;;  %1627 = vmatprep.subr.mxu1 %v1799_v51  ;;  %v2362_v11 = vld [vmem:[%s2444_s2] ss:$0 sm:$0xff] }
 0x148   :  { %vm1427_vm11 = vmpackc.low %vm454_vm10, %vm453_vm9  ;;  %1628 = vmatpush3.msra.mxu1 %v1147_v44 }
 0x149   :  { %1629 = vmatprep.subr.mxu1 %v1799_v51 }
 0x14a   :  { %1630 = vmatpush3.msra.mxu1 %v1146_v45 }
 0x14b   :  { %1631 = vmatprep.subr.mxu1 %v1799_v51 }
 0x14c   :  { %1632 = vmatpush3.msra.mxu1 %v1145_v46 }
 0x14d   :  { %1614 = vmatmul.mubr.msk.bf16.gmra.mxu1 %vm1427_vm11, %v1800_v1  ;;  %1633 = vmatprep.subr.mxu1 %v1799_v51 }
 0x14e   :  { %1637 = vmatprep.mubr.msk.f32.mxu1 %vm1801_vm3, %v1799_v51  ;;  %1634 = vmatpush3.msra.mxu1 %v1144_v48 }
 0x14f   :  { %1635 = vmatprep.subr.mxu1 %v1799_v51 }
 0x150   :  { %1636 = vmatpush3.msra.mxu1 %v1143_v49 }
 0x153   :  { %v1447_v13 = vpop.f32.mrf.mxu0 }
 0x155   :  { %v1448_v14 = vpop.f32.mrf.mxu0 }
 0x156   :  { %v2280_v15 = vadd.f32 %v1448_v14, %v1447_v13 }
 0x157   :  { %v1450_v16 = vpop.f32.mrf.mxu0 }
 0x159   :  { %v1451_v17 = vpop.f32.mrf.mxu0 }
 0x15a   :  { %v2282_v18 = vadd.f32 %v1451_v17, %v1450_v16  ;;  %v850_v16 = vadd.f32 %v2280_v15, %v2362_v11 }
 0x15b   :  { %v1453_v19 = vpop.f32.mrf.mxu0 }
 0x15d   :  { %v1454_v20 = vpop.f32.mrf.mxu0 }
 0x15e   :  { %v2284_v21 = vadd.f32 %v1454_v20, %v1453_v19 }
 0x15f   :  { %v1456_v23 = vpop.f32.mrf.mxu0 }
 0x160   :  { %v858_v44 = vadd.f32 %v2284_v21, %v2362_v11 }
 0x161   :  { %v1457_v61 = vpop.f32.mrf.mxu0 }
 0x162   :  { %v2286_v24 = vadd.f32 %v1457_v61, %v1456_v23 }
 0x163   :  { %v1459_v1 = vpop.f32.mrf.mxu0 }
 0x165   :  { %v1460_v6 = vpop.f32.mrf.mxu0 }
 0x166   :  { %v2288_v5 = vadd.f32 %v1460_v6, %v1459_v1  ;;  %v853_v1 = vadd.f32 %v2282_v18, %v2362_v11 }
 0x167   :  { %v1462_v25 = vpop.f32.mrf.mxu0  ;;  %v1505_v47 = vpop.f32.mrf.mxu1 }
 0x169   :  { %v1463_v26 = vpop.f32.mrf.mxu0  ;;  %v1506_v50 = vpop.f32.mrf.mxu1 }
 0x16a   :  { %v2290_v27 = vadd.f32 %v1463_v26, %v1462_v25  ;;  %v1507_v13 = vadd.f32 %v1506_v50, %v1505_v47  ;;  %v1096_v25 = vld [vmem:[%s2444_s2 + $0x1] sm:$0x1]  ;;  %v1100_v26 = vshrl.u32 %v33_v58, 7 }
 0x16b   :  { %v1508_v52 = vpop.f32.mrf.mxu1  ;;  %vm1097_vm3 = vcmp.le.f32.partialorder %v1096_v25, 0.0  ;;  %vm1106_vm12 = vcmp.le.f32.partialorder %v1096_v25, 1.0  ;;  %vm1115_vm15 = vcmp.le.f32.partialorder %v1096_v25, 2.0  ;;  %vm1124_vm0 = vcmp.le.f32.partialorder %v1096_v25, 3.0 }
 0x16c   :  { %v939_v23 = vadd.f32 %v1507_v13, %v850_v16  ;;  %v1098_v18 = vsel %vm1097_vm3, 1, %v1794_v2  ;;  %v1107_v58 = vsel %vm1106_vm12, 1, %v1794_v2 }
 0x16d   :  { %v1509_v56 = vpop.f32.mrf.mxu1 }
 0x16e   :  { %v1510_v19 = vadd.f32 %v1509_v56, %v1508_v52 }
 0x170   :  { %v942_v15 = vadd.f32 %v1510_v19, %v853_v1 }
 0x174   :  { %v1465_v29 = vpop.f32.mrf.mxu0 }
 0x176   :  { %v1466_v22 = vpop.f32.mrf.mxu0 }
 0x177   :  { %v2292_v28 = vadd.f32 %v1466_v22, %v1465_v29 }
 0x178   :  { %v1468_v30 = vpop.f32.mrf.mxu0 }
 0x17a   :  { %v1469_v31 = vpop.f32.mrf.mxu0 }
 0x17b   :  { %v2294_v32 = vadd.f32 %v1469_v31, %v1468_v30 }
 0x182   :  { %v1511_v57 = vpop.f32.mrf.mxu1 }
 0x184   :  { %v1512_v59 = vpop.f32.mrf.mxu1 }
 0x185   :  { %v1513_v41 = vadd.f32 %v1512_v59, %v1511_v57 }
 0x186   :  { %v1514_v60 = vpop.f32.mrf.mxu1 }
 0x187   :  { %v947_v48 = vadd.f32 %v1513_v41, %v858_v44 }
 0x188   :  { %v1515_v62 = vpop.f32.mrf.mxu1 }
 0x189   :  { %v1516_v47 = vadd.f32 %v1515_v62, %v1514_v60 }
 0x18c   :  { %v1471_v33 = vpop.f32.mrf.mxu0 }
 0x18e   :  { %v1472_v34 = vpop.f32.mrf.mxu0 }
 0x18f   :  { %v2296_v35 = vadd.f32 %v1472_v34, %v1471_v33  ;;  %v1101_v34 = vsub.s32 0, %v1100_v26 }
 0x190   :  { %v1474_v36 = vpop.f32.mrf.mxu0 }
 0x191   :  { %v1111_v42 = vrot.slane %v1107_v58, %v1101_v34 }
 0x192   :  { %v1475_v38 = vpop.f32.mrf.mxu0 }
 0x193   :  { %v2301_v39 = vadd.f32 %v1475_v38, %v1474_v36  ;;  %v1102_v38 = vrot.slane %v1098_v18, %v1101_v34  ;;  %vm1112_vm14 = vcmp.eq.s32.totalorder %v1111_v42, 1 }
 0x195   :  { %vm1103_vm13 = vcmp.eq.s32.totalorder %v1102_v38, 1 }
 0x19a   :  { %v2341_v63 = vpop.f32.mrf.mxu1 }
 0x19c   :  { %v2345_v4 = vpop.f32.mrf.mxu1 }
 0x19d   :  { %v1519_v26 = vadd.f32 %v2345_v4, %v2341_v63  ;;  %v869_v63 = vadd.f32 %v2290_v27, %v2362_v11 }
 0x19e   :  { %v2349_v51 = vpop.f32.mrf.mxu1 }
 0x1a0   :  { %v2353_v9 = vpop.f32.mrf.mxu1 }
 0x1a1   :  { %v1522_v38 = vadd.f32 %v2353_v9, %v2349_v51 }
 0x1a8   :  { %v1477_v53 = vpop.f32.mrf.mxu0 }
 0x1aa   :  { %v1478_v54 = vpop.f32.mrf.mxu0 }
 0x1ab   :  { %v2339_v55 = vadd.f32 %v1478_v54, %v1477_v53  ;;  %v861_v53 = vadd.f32 %v2286_v24, %v2362_v11  ;;  %v1125_v24 = vsel %vm1124_vm0, 1, %v1794_v2 }
 0x1ac   :  { %v2343_v0 = vpop.f32.mrf.mxu0 }
 0x1ad   :  { %v950_v21 = vadd.f32 %v1516_v47, %v861_v53  ;;  %v958_v47 = vadd.f32 %v1522_v38, %v869_v63 }
 0x1ae   :  { %v2347_v7 = vpop.f32.mrf.mxu0 }
 0x1b2   :  { %v2357_v3 = vpop.f32.mrf.mxu1 }
 0x1b4   :  { %v2366_v14 = vpop.f32.mrf.mxu1 }
 0x1b6   :  { %v2372_v20 = vpop.f32.mrf.mxu1 }
 0x1b8   :  { %v2380_v22 = vpop.f32.mrf.mxu1 }
 0x1b9   :  { %v1528_v27 = vadd.f32 %v2380_v22, %v2372_v20  ;;  %v885_v20 = vadd.f32 %v2301_v39, %v2362_v11  ;;  %v1482_v22 = vadd.f32 %v2347_v7, %v2343_v0 }
 0x1bb   :  { %v893_v0 = vadd.f32 %v1482_v22, %v2362_v11 }
 0x1c0   :  { %v2351_v8 = vpop.f32.mrf.mxu0 }
 0x1c2   :  { %v2355_v10 = vpop.f32.mrf.mxu0 }
 0x1c4   :  { %v2364_v12 = vpop.f32.mrf.mxu0 }
 0x1c6   :  { %v2370_v17 = vpop.f32.mrf.mxu0 }
 0x1ce   :  { %v2382_v31 = vpop.f32.mrf.mxu1 }
 0x1d0   :  { %v2385_v37 = vpop.f32.mrf.mxu1 }
 0x1d2   :  { %v2388_v40 = vpop.f32.mrf.mxu1 }
 0x1d3   :  { %v1027_v61 = vpop.f32.mrf.mxu0 }
 0x1d4   :  { %v1028_v6 = vadd.f32 %v1027_v61, %v939_v23  ;;  %v2392_v46 = vpop.f32.mrf.mxu1  ;;  %v1116_v23 = vsel %vm1115_vm15, 1, %v1794_v2 }
 0x1d5   :  { %v1591_v29 = vpop.f32.mrf.mxu0  ;;  %v1120_v1 = vrot.slane %v1116_v23, %v1101_v34 }
 0x1d6   :  { %1744 = vtanh.f32 %v1028_v6  ;;  %v1129_v29 = vrot.slane %v1125_v24, %v1101_v34 }
 0x1d7   :  { %v1030_v30 = vpop.f32.mrf.mxu0  ;;  %vm1121_vm1 = vcmp.eq.s32.totalorder %v1120_v1, 1 }
 0x1d8   :  { %v1031_v33 = vadd.f32 %v1030_v30, %v942_v15  ;;  %vm1130_vm2 = vcmp.eq.s32.totalorder %v1129_v29, 1 }
 0x1d9   :  { %v1592_v36 = vpop.f32.mrf.mxu0 }
 0x1da   :  { %1746 = vtanh.f32 %v1031_v33  ;;  %v866_v33 = vadd.f32 %v2288_v5, %v2362_v11  ;;  %v1525_v5 = vadd.f32 %v2366_v14, %v2357_v3 }
 0x1dc   :  { %v955_v2 = vadd.f32 %v1519_v26, %v866_v33 }
 0x1e1   :  { %v2394_v49 = vpop.f32.mrf.mxu1 }
 0x1e3   :  { %v1745_v43 = vpop.eup %1744  ;;  %v1536_v16 = vpop.f32.mrf.mxu1 }
 0x1e4   :  { %v1104_v45 = vsel %vm1103_vm13, %v1745_v43, -2.0 }
 0x1e5   :  { %v1105_v54 = vmax.f32 %v1104_v45, -2.0  ;;  %v1538_v61 = vpop.f32.mrf.mxu1 }
 0x1e6   :  { %v1035_v50 = vpop.f32.mrf.mxu0 }
 0x1e7   :  { %v1747_v52 = vpop.eup %1746  ;;  %v1036_v56 = vadd.f32 %v1035_v50, %v947_v48  ;;  %v1539_v6 = vpop.f32.mrf.mxu1  ;;  %v874_v48 = vadd.f32 %v2292_v28, %v2362_v11  ;;  %v1534_v28 = vadd.f32 %v2392_v46, %v2388_v40  ;;  %v1485_v40 = vadd.f32 %v2355_v10, %v2351_v8 }
 0x1e8   :  { %v1113_v57 = vsel %vm1112_vm14, %v1747_v52, -2.0  ;;  %v1595_v59 = vpop.f32.mrf.mxu0  ;;  %v1488_v8 = vadd.f32 %v2370_v17, %v2364_v12 }
 0x1e9   :  { %v1114_v13 = vmax.f32 %v1105_v54, %v1113_v57  ;;  %1748 = vtanh.f32 %v1036_v56  ;;  %v1531_v54 = vadd.f32 %v2385_v37, %v2382_v31  ;;  %v963_v56 = vadd.f32 %v1525_v5, %v874_v48 }
 0x1ea   :  { %v1038_v19 = vpop.f32.mrf.mxu0  ;;  %v877_v57 = vadd.f32 %v2294_v32, %v2362_v11  ;;  %v882_v59 = vadd.f32 %v2296_v35, %v2362_v11  ;;  %v890_v35 = vadd.f32 %v2339_v55, %v2362_v11  ;;  %v974_v23 = vadd.f32 %v1534_v28, %v885_v20 }
 0x1eb   :  { %v1039_v60 = vadd.f32 %v1038_v19, %v950_v21  ;;  %v1537_v21 = vadd.f32 %v1536_v16, %v2394_v49  ;;  %v898_v55 = vadd.f32 %v1485_v40, %v2362_v11 }
 0x1ec   :  { %v1596_v62 = vpop.f32.mrf.mxu0  ;;  %v971_v19 = vadd.f32 %v1531_v54, %v882_v59  ;;  %v966_v32 = vadd.f32 %v1528_v27, %v877_v57 }
 0x1ed   :  { %1750 = vtanh.f32 %v1039_v60  ;;  %v1540_v62 = vadd.f32 %v1539_v6, %v1538_v61  ;;  %v979_v26 = vadd.f32 %v1537_v21, %v890_v35 }
 0x1ef   :  { %v982_v6 = vadd.f32 %v1540_v62, %v893_v0 }
 0x1f4   :  { %v1541_v15 = vpop.f32.mrf.mxu1 }
 0x1f6   :  { %v1749_v30 = vpop.eup %1748  ;;  %v1542_v36 = vpop.f32.mrf.mxu1 }
 0x1f7   :  { %v1122_v18 = vsel %vm1121_vm1, %v1749_v30, -2.0  ;;  %v1543_v49 = vadd.f32 %v1542_v36, %v1541_v15 }
 0x1f8   :  { %v1123_v25 = vmax.f32 %v1114_v13, %v1122_v18  ;;  %v1544_v58 = vpop.f32.mrf.mxu1 }
 0x1f9   :  { %v1043_v41 = vpop.f32.mrf.mxu0 }
 0x1fa   :  { %v1751_v42 = vpop.eup %1750  ;;  %v1044_v4 = vadd.f32 %v1043_v41, %v955_v2  ;;  %v1545_v34 = vpop.f32.mrf.mxu1  ;;  %v901_v2 = vadd.f32 %v1488_v8, %v2362_v11 }
 0x1fb   :  { %v1131_v43 = vsel %vm1130_vm2, %v1751_v42, -2.0  ;;  %v1599_v44 = vpop.f32.mrf.mxu0  ;;  %v1546_v18 = vadd.f32 %v1545_v34, %v1544_v58 }
 0x1fc   :  { %v1132_v45 = vmax.f32 %v1123_v25, %v1131_v43  ;;  %1752 = vtanh.f32 %v1044_v4  ;;  %v987_v25 = vadd.f32 %v1543_v49, %v898_v55 }
 0x1fd   :  { %v1046_v51 = vpop.f32.mrf.mxu0  ;;  %v1059_v9 = vpop.f32.mrf.mxu1  ;;  %v990_v12 = vadd.f32 %v1546_v18, %v901_v2 }
 0x1fe   :  { %v1047_v50 = vadd.f32 %v1046_v51, %v958_v47  ;;  %v1060_v39 = vadd.f32 %v1059_v9, %v971_v19 }
 0x1ff   :  { %v1600_v52 = vpop.f32.mrf.mxu0  ;;  %v1607_v53 = vpop.f32.mrf.mxu1 }
 0x200   :  { %1754 = vtanh.f32 %v1047_v50 }
 0x201   :  { %v1051_v3 = vpop.f32.mrf.mxu0  ;;  %v1062_v14 = vpop.f32.mrf.mxu1 }
 0x202   :  { %v1052_v13 = vadd.f32 %v1051_v3, %v963_v56  ;;  %v1063_v16 = vadd.f32 %v1062_v14, %v974_v23  ;;  %v1429_v3 = vld [vmem:[%s2444_s2 + $0x2] ss:$0 sm:$0xff] }
 0x203   :  { %v1603_v31 = vpop.f32.mrf.mxu0  ;;  %v1608_v37 = vpop.f32.mrf.mxu1 }
 0x204   :  { %1756 = vtanh.f32 %v1052_v13 }
 0x205   :  { %v1054_v46 = vpop.f32.mrf.mxu0  ;;  %v1067_v60 = vpop.f32.mrf.mxu1 }
 0x206   :  { %v1055_v1 = vadd.f32 %v1054_v46, %v966_v32  ;;  %v1068_v61 = vadd.f32 %v1067_v60, %v979_v26 }
 0x207   :  { %v1604_v7 = vpop.f32.mrf.mxu0  ;;  %v1611_v24 = vpop.f32.mrf.mxu1 }
 0x208   :  { %1758 = vtanh.f32 %v1055_v1 }
 0x209   :  { %v1753_v29 = vpop.eup %1752  ;;  %v1070_v10 = vpop.f32.mrf.mxu1  ;;  %1760 = vtanh.f32 %v1060_v39 }
 0x20a   :  { %v1133_v30 = vmax.f32 %v1132_v45, %v1753_v29  ;;  %1762 = vtanh.f32 %v1063_v16  ;;  %v1071_v38 = vadd.f32 %v1070_v10, %v982_v6 }
 0x20b   :  { %v1612_v33 = vpop.f32.mrf.mxu1  ;;  %1764 = vtanh.f32 %v1068_v61 }
 0x20c   :  { %1766 = vtanh.f32 %v1071_v38 }
 0x20d   :  { %v1755_v15 = vpop.eup %1754  ;;  %v1075_v36 = vpop.f32.mrf.mxu1 }
 0x20e   :  { %v1134_v41 = vmax.f32 %v1133_v30, %v1755_v15  ;;  %v1076_v42 = vadd.f32 %v1075_v36, %v987_v25 }
 0x20f   :  { %v1615_v63 = vpop.f32.mrf.mxu1 }
 0x210   :  { %1768 = vtanh.f32 %v1076_v42 }
 0x211   :  { %v1757_v17 = vpop.eup %1756  ;;  %v1078_v4 = vpop.f32.mrf.mxu1 }
 0x212   :  { %v1135_v43 = vmax.f32 %v1134_v41, %v1757_v17  ;;  %v1079_v44 = vadd.f32 %v1078_v4, %v990_v12 }
 0x213   :  { %v1616_v5 = vpop.f32.mrf.mxu1 }
 0x214   :  { %1770 = vtanh.f32 %v1079_v44 }
 0x215   :  { %v1759_v58 = vpop.eup %1758 }
 0x216   :  { %v1136_v34 = vmax.f32 %v1135_v43, %v1759_v58  ;;  %v1761_v45 = vpop.eup %1760 }
 0x217   :  { %v1763_v51 = vpop.eup %1762 }
 0x218   :  { %v1137_v47 = vmax.f32 %v1136_v34, %v1761_v45  ;;  %v1765_v11 = vpop.eup %1764 }
 0x219   :  { %v1767_v50 = vpop.eup %1766 }
 0x21a   :  { %v1138_v9 = vmax.f32 %v1137_v47, %v1763_v51 }
 0x21c   :  { %v1139_v48 = vmax.f32 %v1138_v9, %v1765_v11 }
 0x21d   :  { %v1769_v53 = vpop.eup %1768 }
 0x21e   :  { %v1140_v52 = vmax.f32 %v1139_v48, %v1767_v50 }
 0x220   :  { %v1141_v27 = vmax.f32 %v1140_v52, %v1769_v53 }
 0x221   :  { %v1771_v54 = vpop.eup %1770 }
 0x222   :  { %v1142_v56 = vmax.f32 %v1141_v27, %v1771_v54 }
 0x224   :  { %1638 = vmatmul.mubr.msk.f32.vlgmr.msra.gmra.mxu1 %vm1158_vm4, %v1142_v56 }
 0x2e4   :  { %v1228_v14 = vpop.f32.mrf.mxu1 }
 0x2e5   :  { %v1229_v57 = vadd.f32 %v1429_v3, %v1228_v14 }
 0x2e6   :  { %v1639_v59 = vpop.f32.mrf.mxu1 }
 0x2e7   :  { %1233 = vst.msk [vmem:[#allocation2] sm:$0xff] %vm1232_vm5, %v1229_v57 }
 0x2e8   :  { %1783 = shalt.err (!%p1780_p4)
}
 0x2e9   :  { %1243 = dma.vmem_to_hbm [thread:$0]  %s1241_s16, 128, %s2446_s4, [#allocation3]  }
 0x2ea   :  { %1792 = dma.done.wait [#allocation3], 128  }
 0x2eb   :  { %1793 = vsyncadd [#allocation3], 4294967168 }
 0x2ec   :  { %1247 = vsyncpa [#allocation3], 1 }

</bundles_post_ra>
